<compile_context>
chip_gen: v7x
topology: tpu7x:2x2x1
jax: 0.10.0
libtpu: 0.0.40
codegen_flags: <defaults>
</compile_context>

<pallas_src>
import functools

import jax
import jax.numpy as jnp
from jax import lax
from jax.experimental import pallas as pl
from jax.experimental.pallas import tpu as pltpu


def _self_output_kernel(h_ref, res_ref, wt_ref, p_ref, o_ref, *, eps):
    # h_ref:   (TM, H)  hidden_states row tile (activation dtype)
    # res_ref: (TM, H)  input_tensor (residual) row tile
    # wt_ref:  (H, H)   dense weight, pre-transposed to (in, out) layout
    # p_ref:   (3, H)   f32 packed [bias; gamma; beta], VMEM resident
    # o_ref:   (TM, H)  output row tile
    #
    # Canonical contraction (last dim of h with first dim of w_t): feeds the
    # MXU directly, accumulates in f32.
    y = jnp.dot(h_ref[...], wt_ref[...], preferred_element_type=jnp.float32)

    p = p_ref[...]                              # (3, H) f32
    bias, gamma, beta = p[0, :], p[1, :], p[2, :]

    y = y + bias

    # TODO(synk): dropout is identity at inference; training-mode dropout
    # (pltpu.prng_* + mask) is intentionally not implemented here.

    # Residual add + LayerNorm over the hidden dim, all in f32.
    y = y + res_ref[...].astype(jnp.float32)
    mean = jnp.mean(y, axis=-1, keepdims=True)
    yc = y - mean
    var = jnp.mean(yc * yc, axis=-1, keepdims=True)
    inv = lax.rsqrt(var + eps)
    o_ref[...] = (yc * inv * gamma + beta).astype(o_ref.dtype)


_DEFAULT_TILE_BUDGET = 28 * 1024 * 1024   # bytes of VMEM for blocks + f32 temporaries


def _block_vmem_bytes(tm, hidden, act_itemsize, w_itemsize):
    """VMEM footprint estimate for the chosen block sizes."""
    resident = hidden * hidden * w_itemsize + 3 * hidden * 4   # weight (1 buf) + packed params
    streams = 3 * tm * hidden * act_itemsize * 2               # h / res / out, double-buffered
    temps = 2 * tm * hidden * 4                                # f32 matmul result + centered copy
    return resident + streams + temps


def _pick_row_tile(m_rows, hidden, act_itemsize, w_itemsize,
                   budget=_DEFAULT_TILE_BUDGET):
    """Largest row tile that divides M, fits the VMEM budget, keeps sublane
    alignment for the activation dtype, and (when possible) yields >= 2 tiles
    with an even count so megacore (v7x) can split the 1-D parallel grid."""
    min_tile = 16 if act_itemsize < 4 else 8       # packed-sublane minimum (bf16 -> 16)
    max_tile = 512 if act_itemsize <= 2 else 256   # >= ~0.5-1 MiB blocks hit ~85% HBM roofline
    candidates = [t for t in (512, 256, 128, 64, 32, 16, 8)
                  if min_tile <= t <= max_tile]
    fitting = [t for t in candidates
               if m_rows % t == 0
               and _block_vmem_bytes(t, hidden, act_itemsize, w_itemsize) <= budget]
    if not fitting:
        # Fallback: whole-array block (block_shape == array dims is always legal).
        return m_rows
    for t in fitting:                              # prefer an even tile count >= 2
        n = m_rows // t
        if n >= 2 and n % 2 == 0:
            return t
    for t in fitting:                              # then any tile count >= 2
        if m_rows // t >= 2:
            return t
    return fitting[0]


def bert_self_output(hidden_states, input_tensor, weight, bias, gamma, beta,
                     eps=1e-12):
    """BertSelfOutput forward.

    hidden_states: (B, S, H)   output of self-attention
    input_tensor:  (B, S, H)   residual input
    weight:        (H, H)      nn.Linear weight, PyTorch (out, in) layout
    bias, gamma, beta: (H,)
    returns (B, S, H)
    """
    B, S, H = hidden_states.shape
    M = B * S
    act_dtype = hidden_states.dtype
    act_itemsize = jnp.dtype(act_dtype).itemsize

    # One-time weight prep (free for inference weights): transpose to (in, out)
    # and align dtype with the activations to avoid a silently-promoted mixed
    # bf16/f32 matmul.
    w_t = jnp.transpose(jnp.asarray(weight, dtype=act_dtype))      # (H_in, H_out)

    h2d = hidden_states.reshape(M, H)
    r2d = jnp.asarray(input_tensor, dtype=act_dtype).reshape(M, H)

    # bias / gamma / beta packed into a single resident (3, H) f32 block
    # (one DMA descriptor instead of three).
    params = jnp.stack(
        [jnp.asarray(bias, jnp.float32),
         jnp.asarray(gamma, jnp.float32),
         jnp.asarray(beta, jnp.float32)], axis=0)

    tm = _pick_row_tile(M, H, act_itemsize, act_itemsize)
    n_tiles = M // tm

    vmem_est = _block_vmem_bytes(tm, H, act_itemsize, act_itemsize)
    vmem_limit = int(min(max(vmem_est * 1.25, 16 * 1024 * 1024),
                         48 * 1024 * 1024))       # <= ~48 MiB keeps v7x (64 MiB/TC) safe

    cost = pl.CostEstimate(
        flops=2 * M * H * H + 10 * M * H,
        transcendentals=M,                          # one rsqrt per row
        bytes_accessed=(3 * M * H * act_itemsize    # hidden + residual in, out
                        + H * H * act_itemsize      # weight (read once, resident)
                        + 3 * H * 4),               # packed params
    )

    kernel = functools.partial(_self_output_kernel, eps=float(eps))

    out2d = pl.pallas_call(
        kernel,
        out_shape=jax.ShapeDtypeStruct((M, H), act_dtype),
        grid_spec=pltpu.PrefetchScalarGridSpec(
            num_scalar_prefetch=0,
            grid=(n_tiles,),
            in_specs=[
                pl.BlockSpec((tm, H), lambda i: (i, 0)),     # hidden row tile
                pl.BlockSpec((tm, H), lambda i: (i, 0)),     # residual row tile
                pl.BlockSpec((H, H), lambda i: (0, 0),       # resident weight, single-buffered
                             pipeline_mode=pl.Buffered(1)),
                pl.BlockSpec((3, H), lambda i: (0, 0),       # resident bias/gamma/beta
                             pipeline_mode=pl.Buffered(1)),
            ],
            out_specs=pl.BlockSpec((tm, H), lambda i: (i, 0)),
        ),
        compiler_params=pltpu.CompilerParams(
            dimension_semantics=("parallel",),     # row tiles are independent (megacore)
            vmem_limit_bytes=vmem_limit,
        ),
        cost_estimate=cost,
    )(h2d, r2d, w_t, params)

    return out2d.reshape(B, S, H)


if __name__ == "__main__":
    # Small shapes consistent with BertSelfOutput: batch=2, seq=8, hidden=32.
    B, S, H = 2, 8, 32
    eps = 1e-12
    key = jax.random.PRNGKey(0)
    k_h, k_r, k_w, k_b, k_g, k_be = jax.random.split(key, 6)

    hidden_states = jax.random.normal(k_h, (B, S, H), dtype=jnp.float32)
    input_tensor = jax.random.normal(k_r, (B, S, H), dtype=jnp.float32)
    weight = jax.random.normal(k_w, (H, H), dtype=jnp.float32) * 0.02
    bias = jax.random.normal(k_b, (H,), dtype=jnp.float32) * 0.02
    gamma = 1.0 + jax.random.normal(k_g, (H,), dtype=jnp.float32) * 0.02
    beta = jax.random.normal(k_be, (H,), dtype=jnp.float32) * 0.02

    out = bert_self_output(hidden_states, input_tensor, weight, bias, gamma,
                           beta, eps=eps)
    out = jax.block_until_ready(out)

    # Reference in plain JAX (dropout is identity at inference).
    dense = jnp.einsum("bsh,oh->bso", hidden_states, weight) + bias
    y = dense + input_tensor
    mean = y.mean(axis=-1, keepdims=True)
    var = ((y - mean) ** 2).mean(axis=-1, keepdims=True)
    ref = (y - mean) / jnp.sqrt(var + eps) * gamma + beta

    assert out.shape == (B, S, H)
    assert jnp.allclose(out, ref, atol=1e-5, rtol=1e-5)

    print("KERNEL_OK")
</pallas_src>

<mosaic_0001>
module attributes {stable_mosaic.version = 11 : i64} {
  func.func @_self_output_kernel(%arg0: i32, %arg1: memref<8x32xf32, #tpu.memory_space<vmem>>, %arg2: memref<8x32xf32, #tpu.memory_space<vmem>>, %arg3: memref<32x32xf32, #tpu.memory_space<vmem>>, %arg4: memref<3x32xf32, #tpu.memory_space<vmem>>, %arg5: memref<8x32xf32, #tpu.memory_space<vmem>>) attributes {dimension_semantics = [#tpu.dimension_semantics<parallel>], iteration_bounds = array<i64: 2>, scalar_prefetch = 0 : i64, scratch_operands = 0 : i64, tpu.core_type = #tpu.core_type<tc>, window_params = [{transform_indices = @transform_0, window_bounds = array<i64: 8, 32>}, {transform_indices = @transform_1, window_bounds = array<i64: 8, 32>}, {pipeline_mode = #tpu.pipeline_mode<synchronous>, transform_indices = @transform_2, window_bounds = array<i64: 32, 32>}, {pipeline_mode = #tpu.pipeline_mode<synchronous>, transform_indices = @transform_3, window_bounds = array<i64: 3, 32>}, {transform_indices = @transform_4, window_bounds = array<i64: 8, 32>}]} {
    %c0 = arith.constant 0 : index
    %c0_0 = arith.constant 0 : index
    %0 = vector.load %arg1[%c0, %c0_0] : memref<8x32xf32, #tpu.memory_space<vmem>>, vector<8x32xf32>
    %c0_1 = arith.constant 0 : index
    %c0_2 = arith.constant 0 : index
    %1 = vector.load %arg3[%c0_1, %c0_2] : memref<32x32xf32, #tpu.memory_space<vmem>>, vector<32x32xf32>
    %cst = arith.constant dense<0.000000e+00> : vector<8x32xf32>
    %2 = tpu.matmul %0, %1, %cst {dimension_numbers = #tpu.dot_dimension_numbers<[1], [0], [0], [1], [0, 0, 1, 1], [], []>} : vector<8x32xf32>, vector<32x32xf32>, vector<8x32xf32> -> vector<8x32xf32>
    %c0_3 = arith.constant 0 : index
    %c0_4 = arith.constant 0 : index
    %3 = vector.load %arg4[%c0_3, %c0_4] : memref<3x32xf32, #tpu.memory_space<vmem>>, vector<3x32xf32>
    %4 = vector.extract_strided_slice %3 {offsets = [0, 0], sizes = [1, 32], strides = [1, 1]} : vector<3x32xf32> to vector<1x32xf32>
    %5 = vector.shape_cast %4 : vector<1x32xf32> to vector<32xf32>
    %6 = vector.extract_strided_slice %3 {offsets = [1, 0], sizes = [1, 32], strides = [1, 1]} : vector<3x32xf32> to vector<1x32xf32>
    %7 = vector.shape_cast %6 : vector<1x32xf32> to vector<32xf32>
    %8 = vector.extract_strided_slice %3 {offsets = [2, 0], sizes = [1, 32], strides = [1, 1]} : vector<3x32xf32> to vector<1x32xf32>
    %9 = vector.shape_cast %8 : vector<1x32xf32> to vector<32xf32>
    %10 = vector.shape_cast %5 : vector<32xf32> to vector<1x32xf32>
    %11 = vector.broadcast %10 : vector<1x32xf32> to vector<8x32xf32>
    %12 = arith.addf %2, %11 : vector<8x32xf32>
    %c0_5 = arith.constant 0 : index
    %c0_6 = arith.constant 0 : index
    %13 = vector.load %arg2[%c0_5, %c0_6] : memref<8x32xf32, #tpu.memory_space<vmem>>, vector<8x32xf32>
    %14 = arith.addf %12, %13 : vector<8x32xf32>
    %cst_7 = arith.constant dense<0.000000e+00> : vector<8xf32>
    %15 = vector.multi_reduction <add>, %14, %cst_7 [1] : vector<8x32xf32> to vector<8xf32>
    %16 = vector.shape_cast %15 : vector<8xf32> to vector<8x1xf32>
    %cst_8 = arith.constant 3.200000e+01 : f32
    %17 = vector.broadcast %cst_8 : f32 to vector<8x1xf32>
    %18 = arith.divf %16, %17 : vector<8x1xf32>
    %19 = vector.broadcast %18 : vector<8x1xf32> to vector<8x32xf32>
    %20 = arith.subf %14, %19 : vector<8x32xf32>
    %21 = arith.mulf %20, %20 : vector<8x32xf32>
    %cst_9 = arith.constant dense<0.000000e+00> : vector<8xf32>
    %22 = vector.multi_reduction <add>, %21, %cst_9 [1] : vector<8x32xf32> to vector<8xf32>
    %23 = vector.shape_cast %22 : vector<8xf32> to vector<8x1xf32>
    %cst_10 = arith.constant 3.200000e+01 : f32
    %24 = vector.broadcast %cst_10 : f32 to vector<8x1xf32>
    %25 = arith.divf %23, %24 : vector<8x1xf32>
    %cst_11 = arith.constant 9.99999996E-13 : f32
    %26 = vector.broadcast %cst_11 : f32 to vector<8x1xf32>
    %27 = arith.addf %25, %26 : vector<8x1xf32>
    %28 = math.rsqrt %27 : vector<8x1xf32>
    %29 = vector.broadcast %28 : vector<8x1xf32> to vector<8x32xf32>
    %30 = arith.mulf %20, %29 : vector<8x32xf32>
    %31 = vector.shape_cast %7 : vector<32xf32> to vector<1x32xf32>
    %32 = vector.broadcast %31 : vector<1x32xf32> to vector<8x32xf32>
    %33 = arith.mulf %30, %32 : vector<8x32xf32>
    %34 = vector.shape_cast %9 : vector<32xf32> to vector<1x32xf32>
    %35 = vector.broadcast %34 : vector<1x32xf32> to vector<8x32xf32>
    %36 = arith.addf %33, %35 : vector<8x32xf32>
    %c0_12 = arith.constant 0 : index
    %c0_13 = arith.constant 0 : index
    %37 = vector.load %arg5[%c0_12, %c0_13] : memref<8x32xf32, #tpu.memory_space<vmem>>, vector<8x32xf32>
    tpu.vector_store %arg5[%c0_12, %c0_13], %36 {strides = array<i32>} : memref<8x32xf32, #tpu.memory_space<vmem>>, vector<8x32xf32>,
    return
  }
  func.func @transform_0(%arg0: i32) -> (i32, i32) {
    %c0_i32 = arith.constant 0 : i32
    %c0_i32_0 = arith.constant 0 : i32
    return %arg0, %c0_i32 : i32, i32
  }
  func.func @transform_1(%arg0: i32) -> (i32, i32) {
    %c0_i32 = arith.constant 0 : i32
    %c0_i32_0 = arith.constant 0 : i32
    return %arg0, %c0_i32 : i32, i32
  }
  func.func @transform_2(%arg0: i32) -> (i32, i32) {
    %c0_i32 = arith.constant 0 : i32
    %c0_i32_0 = arith.constant 0 : i32
    %c0_i32_1 = arith.constant 0 : i32
    return %c0_i32, %c0_i32_0 : i32, i32
  }
  func.func @transform_3(%arg0: i32) -> (i32, i32) {
    %c0_i32 = arith.constant 0 : i32
    %c0_i32_0 = arith.constant 0 : i32
    %c0_i32_1 = arith.constant 0 : i32
    return %c0_i32, %c0_i32_0 : i32, i32
  }
  func.func @transform_4(%arg0: i32) -> (i32, i32) {
    %c0_i32 = arith.constant 0 : i32
    %c0_i32_0 = arith.constant 0 : i32
    return %arg0, %c0_i32 : i32, i32
  }
}

</mosaic_0001>

<bundles_post_ra>
// kernel: tpu_custom_call.1
= control target key start
LH: loop header
LB: loop body
LE: loop exit
PB: predicated region body
PF: predicated region fallthrough
CT: control target
= control target key end

     0   :  { %s1040_s0 = inlined_call_operand.hbm [shape: f32[16,32], index: 0, kind: input, shape index: {}]   ;;  %s1041_s1 = inlined_call_operand.hbm [shape: f32[16,32], index: 1, kind: input, shape index: {}]   ;;  %s1042_s2 = inlined_call_operand.hbm [shape: f32[32,32], index: 2, kind: input, shape index: {}]   ;;  %s1043_s3 = inlined_call_operand.vmem [shape: f32[3,32], index: 3, kind: input, shape index: {}]   ;;  %s1044_s4 = inlined_call_operand.hbm [shape: f32[16,32], index: 4, kind: output, shape index: {}]  }
   0x1   :  { %1049 = sst [smem:[#allocation13_spill]] %s1042_s2 }
   0x2   :  { %9 = vsyncpa [#allocation3], 0 }
   0x3   :  { %11 = vsyncpa [#allocation3 + $0x1], 0 }
   0x4   :  { %12 = vsyncpa [#allocation6], 0 }
   0x5   :  { %14 = vsyncpa [#allocation6 + $0x1], 0 }
   0x6   :  { %15 = vsyncpa [#allocation4], 0 }
   0x7   :  { %17 = vsyncpa [#allocation4 + $0x1], 0  ;;  %s798_s15 = smov 0   ;;  %s800_s16 = smov 0  }
   0x8   :  { %s802_s17 = smov 0   ;;  %s804_s18 = smov 0  }
   0x9 LB: > { %s819_s19 = sadd.s32 4294967295, %s762_s18   ;;  %s491_s20 = sadd.s32 4294967294, %s762_s18   ;;  %s762_s18 = sphi %s804_s18, %s1068_s18   ;;  %s758_s17 = sphi %s802_s17, %s1067_s17   ;;  %s754_s16 = sphi %s800_s16, %s1066_s16   ;;  %s750_s15 = sphi %s798_s15, %s1065_s15  }
   0xa   : > { %p43_p0 = scmp.ne.s32.totalorder %s754_s16, %s750_s15  ;;  %p1045_p1 = scmp.eq.s32.totalorder %s819_s19, 0 }
   0xb   : > { %p141_p3 = scmp.eq.s32.totalorder %s491_s20, 1  ;;  %p492_p5 = scmp.ge.s32.totalorder %s762_s18, 1 }
   0xc   : > { %p828_p4 = por %p1045_p1, %p43_p0  ;;  %p148_p7 = scmp.lt.s32.totalorder %s762_s18, 3 }
   0xd   : > { %p833_p6 = por %p141_p3, %p43_p0  ;;  %s764_s24 = smov [#allocation7]  }
   0xe   : > { %s1050_s21 = scalar_select %p828_p4, 1, 0 }
   0xf   : > { %s1051_s22 = scalar_select %p833_p6, 1, 0 }
  0x10   : > { %p838_p8 = pnand %p492_p5, %p148_p7  ;;  %s160_s25 = sshll.u32 %s764_s24, 4  ;;  %s842_s25 = int_to_ptr.vmem [resolvable:$true] %s160_s25 }
  0x11   : > { %s854_s27 = sadd.s32 1, %s762_s18   ;;  %s30_s28 = sadd.s32 1, %s758_s17 }
  0x12   : > { %s1052_s23 = scalar_select %p838_p8, 1, 0 }
  0x13   : > { %p541_p9 = pneg %p838_p8  ;;  %s27_s29 = ssub.s32 %s762_s18, %s854_s27 }
  0x14   : > { %s1054_s2 = sld [smem:[#allocation13_spill]] }
  0x15   : > { %p849_p11 = pnand %p541_p9, %p1045_p1 }
  0x17   : > { %p602_p13 = pneg %p849_p11 }
  0x1a   : > { %s600_s6 = scalar_lea.hbm %s1054_s2, 512 }
  0x1b   : > { %p601_p12 = scmp.ne.s32.totalorder %s1054_s2, %s600_s6  ;;  %p607_p5 = scmp.lt.u32.totalorder %s600_s6, %s1054_s2 }
  0x1d   : > { %p603_p0 = pnand %p602_p13, %p601_p12 }
  0x1f   : > { %p604_p3 = pneg %p603_p0 }
  0x21   : > { %p609_p7 = pnand %p607_p5, %p604_p3 }
  0x23   : > { %612 = shalt.err (!%p609_p7)
}
  0x24   : > { %s613_s11 = scalar_lea.vmem %s842_s25, 512  ;;  %p621_p2 = scmp.lt.s32.totalorder %s842_s25, %s842_s25 }
  0x25   : > { %p614_p9 = scmp.ne.s32.totalorder %s842_s25, %s613_s11  ;;  %p622_p6 = scmp.lt.s32.totalorder %s613_s11, %s613_s11 }
  0x27   : > { %p616_p10 = pnand %p614_p9, %p602_p13  ;;  %p623_p4 = por %p622_p6, %p621_p2 }
  0x29   : > { %p617_p1 = pneg %p616_p10 }
  0x2b   : > { %p624_p8 = pnand %p623_p4, %p617_p1 }
  0x2d   : > { %627 = shalt.err (!%p624_p8)
}
  0x2e   : > { %s765_s12 = smov 128   ;;  %s766_s13 = smov 8  }
  0x2f   : > { %544 = dma.hbm_to_vmem [thread:$0]  (!%p849_p11), %s1054_s2, 512, %s842_s25, [#allocation6], %s765_s12, %s765_s12, %s766_s13  }
  0x30   : > { %p28_p2 = scmp.eq.s32.totalorder %s27_s29, 0  ;;  %p37_p1 = scmp.ne.s32.totalorder %s758_s17, %s754_s16 }
  0x31   : > { %p38_p4 = scmp.eq.s32.totalorder %s762_s18, 0  ;;  %p557_p6 = scmp.lt.s32.totalorder %s762_s18, 2 }
  0x32   : > { %s885_s24 = scalar_select %p28_p2, %s758_s17, %s30_s28  }
  0x33   : > { %p39_p8 = por %p38_p4, %p37_p1  ;;  %p1055_p10 = scmp.eq.s32.totalorder %s819_s19, 1 }
  0x34   : > { %s177_s5 = sand.u32 1, %s758_s17   ;;  %s496_s6 = sshll.u32 %s762_s18, 7 }
  0x35   : > { %p889_p12 = por %p1055_p10, %p37_p1  ;;  %s895_s7 = sshll.u32 %s177_s5, 3 }
  0x36   : > { %s900_s25 = scalar_lea.hbm %s1040_s0, %s496_s6  ;;  %s181_s28 = scalar_lea.vmem [#allocation2], %s895_s7 }
  0x37   : > { %s1056_s30 = scalar_select %p889_p12, 1, 0 }
  0x38   : > { %s188_s29 = sshll.u32 %s181_s28, 4  ;;  %p903_p11 = pnand %p557_p6, %p39_p8  ;;  %s907_s29 = int_to_ptr.vmem [resolvable:$true] %s188_s29 }
  0x39   : > { %s912_s12 = scalar_lea.hbm %s1041_s1, %s496_s6  ;;  %s178_s13 = scalar_lea.sflag [#allocation3], %s177_s5 }
  0x3a   : > { %s628_s14 = scalar_lea.hbm %s900_s25, 128  ;;  %p630_p0 = pneg %p903_p11 }
  0x3b   : > { %p629_p13 = scmp.ne.s32.totalorder %s900_s25, %s628_s14  ;;  %s633_s8 = scalar_lea.hbm %s1040_s0, 256 }
  0x3c   : > { %p634_p7 = scmp.lt.u32.totalorder %s900_s25, %s1040_s0  ;;  %p635_p9 = scmp.lt.u32.totalorder %s633_s8, %s628_s14 }
  0x3d   : > { %p631_p3 = pnand %p630_p0, %p629_p13  ;;  %p637_p1 = scmp.lt.u32.totalorder %s628_s14, %s900_s25 }
  0x3e   : > { %p636_p2 = por %p635_p9, %p634_p7 }
  0x3f   : > { %p632_p5 = pneg %p631_p3 }
  0x40   : > { %p638_p4 = por %p637_p1, %p636_p2 }
  0x42   : > { %p639_p6 = pnand %p638_p4, %p632_p5 }
  0x44   : > { %642 = shalt.err (!%p639_p6)
}
  0x45   : > { %s643_s5 = scalar_lea.vmem %s907_s29, 128  ;;  %s767_s6 = smov [#allocation2]  }
  0x46   : > { %p644_p8 = scmp.ne.s32.totalorder %s907_s29, %s643_s5  ;;  %s648_s10 = sshll.u32 %s767_s6, 4  ;;  %s649_s10 = int_to_ptr.vmem [resolvable:$false] %s648_s10 }
  0x47   : > { %s650_s2 = scalar_lea.vmem %s649_s10, 256  ;;  %p651_p3 = scmp.lt.s32.totalorder %s907_s29, %s649_s10 }
  0x48   : > { %p646_p10 = pnand %p644_p8, %p630_p0  ;;  %p652_p7 = scmp.lt.s32.totalorder %s650_s2, %s643_s5 }
  0x4a   : > { %p647_p13 = pneg %p646_p10  ;;  %p653_p9 = por %p652_p7, %p651_p3 }
  0x4c   : > { %p654_p2 = pnand %p653_p9, %p647_p13 }
  0x4e   : > { %657 = shalt.err (!%p654_p2)
}
  0x4f   : > { %548 = dma.hbm_to_vmem [thread:$0]  (!%p903_p11), %s900_s25, 128, %s907_s29, %s178_s13  }
  0x50   : > { %s195_s11 = sand.u32 1, %s762_s18   ;;  %s199_s14 = scalar_lea.vmem [#allocation5], %s895_s7 }
  0x51   : > { %s206_s20 = sshll.u32 %s199_s14, 4  ;;  %s196_s26 = scalar_lea.sflag [#allocation6], %s195_s11  ;;  %s207_s20 = int_to_ptr.vmem [resolvable:$true] %s206_s20 }
  0x52   : > { %s658_s8 = scalar_lea.hbm %s912_s12, 128  ;;  %s663_s6 = scalar_lea.hbm %s1041_s1, 256 }
  0x53   : > { %p659_p5 = scmp.ne.s32.totalorder %s912_s12, %s658_s8  ;;  %p664_p6 = scmp.lt.u32.totalorder %s912_s12, %s1041_s1 }
  0x54   : > { %p665_p8 = scmp.lt.u32.totalorder %s663_s6, %s658_s8  ;;  %p667_p13 = scmp.lt.u32.totalorder %s658_s8, %s912_s12 }
  0x55   : > { %p661_p1 = pnand %p659_p5, %p630_p0 }
  0x56   : > { %p666_p10 = por %p665_p8, %p664_p6 }
  0x57   : > { %p662_p4 = pneg %p661_p1 }
  0x58   : > { %p668_p3 = por %p667_p13, %p666_p10 }
  0x5a   : > { %p669_p7 = pnand %p668_p3, %p662_p4 }
  0x5c   : > { %672 = shalt.err (!%p669_p7)
}
  0x5d   : > { %s673_s7 = scalar_lea.vmem %s207_s20, 128  ;;  %s768_s25 = smov [#allocation5]  }
  0x5e   : > { %p674_p9 = scmp.ne.s32.totalorder %s207_s20, %s673_s7  ;;  %s678_s29 = sshll.u32 %s768_s25, 4  ;;  %s679_s29 = int_to_ptr.vmem [resolvable:$false] %s678_s29 }
  0x5f   : > { %s680_s13 = scalar_lea.vmem %s679_s29, 256  ;;  %p681_p1 = scmp.lt.s32.totalorder %s207_s20, %s679_s29 }
  0x60   : > { %p676_p2 = pnand %p674_p9, %p630_p0  ;;  %p682_p12 = scmp.lt.s32.totalorder %s680_s13, %s673_s7 }
  0x62   : > { %p677_p5 = pneg %p676_p2  ;;  %p683_p6 = por %p682_p12, %p681_p1 }
  0x64   : > { %p684_p8 = pnand %p683_p6, %p677_p5 }
  0x66   : > { %687 = shalt.err (!%p684_p8)
}
  0x67   : > { %551 = dma.hbm_to_vmem [thread:$0]  (!%p903_p11), %s912_s12, 128, %s207_s20, %s196_s26  }
  0x68   : > { %p1058_p4 = scmp.ne.s32.totalorder %s1052_s23, 0 }
  0x69   : > { %s963_s11 = sand.u32 (!%p1058_p4), 1, %s754_s16   ;;  %p1059_p12 = scmp.ne.s32.totalorder (!%p1058_p4), %s1050_s21, 0 }
  0x6a   : > { %215 = sbr.rel (%p1058_p4) target bundleno = 673 (0x2a1), region = 36  ;;  %s966_s14 = sshll.u32 (!%p1058_p4), %s963_s11, 3 }
  0x6b   : > { %s218_s8 = scalar_lea.sflag (!%p1058_p4), [#allocation3], %s963_s11  ;;  %s221_s28 = scalar_lea.vmem (!%p1058_p4), [#allocation2], %s966_s14 }
  0x71   : > { %733 = dma.done.wait (%p1059_p12), %s218_s8, 128  }
  0x72   : > { %735 = vsyncadd (%p1059_p12), %s218_s8, 4294967168  ;;  %s226_s23 = sand.u32 1, %s819_s19   ;;  %s230_s12 = scalar_lea.vmem [#allocation5], %s966_s14 }
  0x73   : > { %s227_s9 = scalar_lea.sflag [#allocation6], %s226_s23 }
  0x74   : > { %737 = dma.done.wait (%p1059_p12), %s227_s9, 128  }
  0x75   : > { %739 = vsyncadd (%p1059_p12), %s227_s9, 4294967168  ;;  %p1060_p11 = scmp.eq.s32.totalorder %s819_s19, 0 }
  0x77   : > { %741 = dma.done.wait (%p1060_p11), [#allocation6], 512   ;;  %p1061_p0 = pmov %p1060_p11 }
  0x78   : > { %v769_v0 = vmov 0.0|0.0   ;;  %vm770_vm0 = vmmov 0   ;;  %v771_v1 = vmov 0.0   ;;  %v265_v2 = vld [vmem:[#allocation7] sm:$0xff]  ;;  %v266_v3 = vld [vmem:[#allocation7 + $0x8] sm:$0xff]  ;;  %v267_v4 = vld [vmem:[#allocation7 + $0x10] sm:$0xff]  ;;  %v270_v9 = vlaneseq }
  0x79   : > { %743 = vsyncadd (%p1061_p0), [#allocation6], 4294966784  ;;  %525 = vmatprep.subr.bf16.mxu0 %v769_v0  ;;  %522 = vmatprep.mubr.msk.f32.mxu0 %vm770_vm0, %v771_v1  ;;  %v526_v5 = vpack.c.bf16 %v266_v3, %v265_v2  ;;  %v268_v6 = vld [vmem:[#allocation7 + $0x18] sm:$0xff]  ;;  %v264_v8 = vld [vmem:[%s221_s28] sm:$0xff]  ;;  %vm274_vm1 = vcmask 261120   ;;  %s506_s26 = sshll.u32 %s819_s19, 7 }
  0x7a   : > { %v529_v7 = vpack.c.bf16 %v268_v6, %v267_v4  ;;  %v271_v10 = vshrl.u32 %v270_v9, 7  ;;  %v269_v12 = vld [vmem:[%s1043_s3] sm:$0x7]  ;;  %v348_v15 = vld [vmem:[%s230_s12] sm:$0xff]  ;;  %s263_s5 = scalar_lea.vmem [#allocation8], %s966_s14  ;;  %s995_s7 = scalar_lea.hbm %s1044_s4, %s506_s26 }
  0x7b   : > { %527 = vmatpush3.bf16.msra.mxu0 %v526_v5  ;;  %s389_s6 = sshll.u32 %s263_s5, 4  ;;  %s376_s25 = scalar_lea.sflag [#allocation4], %s963_s11  ;;  %s997_s6 = int_to_ptr.vmem [resolvable:$true] %s389_s6 }
  0x7c   : > { %528 = vmatprep.subr.bf16.mxu0 %v769_v0  ;;  %v272_v11 = vsub.s32 0, %v271_v10  ;;  %v366_v28 = vsub.s32 1, %v271_v10  ;;  %v371_v29 = vsub.s32 2, %v271_v10  ;;  %s688_s29 = scalar_lea.vmem %s997_s6, 128  ;;  %p1062_p13 = scmp.ne.s32.totalorder %s1056_s30, 0 }
  0x7d   : > { %p689_p10 = scmp.ne.s32.totalorder %s997_s6, %s688_s29  ;;  %s772_s19 = smov [#allocation8]  }
  0x7e   : > { %v273_v13 = vrot.slane %v269_v12, %v272_v11  ;;  %v367_v30 = vrot.slane %v269_v12, %v366_v28  ;;  %v372_v32 = vrot.slane %v269_v12, %v371_v29  ;;  %s692_s13 = sshll.u32 %s772_s19, 4  ;;  %s693_s13 = int_to_ptr.vmem [resolvable:$false] %s692_s13 }
  0x7f   : > { %530 = vmatpush3.bf16.msra.mxu0 %v529_v7  ;;  %p690_p3 = pnand %p689_p10, %p1062_p13  ;;  %s694_s14 = scalar_lea.vmem %s693_s13, 256 }
  0x80   : > { %p695_p9 = scmp.lt.s32.totalorder %s997_s6, %s693_s13  ;;  %p696_p2 = scmp.lt.s32.totalorder %s694_s14, %s688_s29 }
  0x81   : > { %p691_p7 = pneg %p690_p3 }
  0x82   : > { %523 = vmatmul.mubr.msk.f32.vlgmr.msra.gmra.mrb[0].mxu0 %vm274_vm1, %v264_v8  ;;  %p697_p5 = por %p696_p2, %p695_p9 }
  0x84   : > { %p698_p1 = pnand %p697_p5, %p691_p7 }
 0x155   : > { %v344_v14 = vpop.f32.mrb[0].mxu0 }
 0x156   : > { %v345_v16 = vadd.f32 %v344_v14, %v273_v13  ;;  %v524_v17 = vpop.f32.mrb[1].mxu0 }
 0x158   : > { %v349_v18 = vadd.f32 %v348_v15, %v345_v16 }
 0x15a   : > { %v350_v19 = vsel %vm274_vm1, %v349_v18, 0.0 }
 0x15b   : > { %351 = vadd.xlane.f32.xlu0 %v350_v19 }
 0x1e8   : > { %v352_v20 = vpop.xlane.xlu0 %351 }
 0x1e9   : > { %v354_v21 = vmul.f32 0.03125, %v352_v20 }
 0x1eb   : > { %v355_v22 = vsub.f32 %v349_v18, %v354_v21 }
 0x1ed   : > { %v356_v23 = vmul.f32 %v355_v22, %v355_v22 }
 0x1ef   : > { %v357_v24 = vsel %vm274_vm1, %v356_v23, 0.0 }
 0x1f0   : > { %358 = vadd.xlane.f32.xlu0 %v357_v24 }
 0x27d   : > { %v359_v25 = vpop.xlane.xlu0 %358 }
 0x27e   : > { %v360_v26 = vmul.f32 0.03125, %v359_v25 }
 0x280   : > { %v361_v27 = vadd.f32 1e-12, %v360_v26 }
 0x282   : > { %598 = vrsqrt.f32 %v361_v27 }
 0x28c   : > { %v599_v31 = vpop.eup %598 }
 0x28d   : > { %v363_v33 = vmul.f32 %v599_v31, %v355_v22 }
 0x28f   : > { %v368_v34 = vmul.f32 %v367_v30, %v363_v33 }
 0x291   : > { %v373_v35 = vadd.f32 %v372_v32, %v368_v34 }
 0x293   : > { %374 = vst.msk [vmem:[%s263_s5] sm:$0xff] %vm274_vm1, %v373_v35 }
 0x294   : > { %701 = shalt.err (!%p698_p1)
}
 0x295   : > { %s702_s11 = scalar_lea.hbm %s995_s7, 128  ;;  %s706_s23 = scalar_lea.hbm %s1044_s4, 256 }
 0x296   : > { %p703_p6 = scmp.ne.s32.totalorder %s995_s7, %s702_s11  ;;  %p707_p12 = scmp.lt.u32.totalorder %s995_s7, %s1044_s4 }
 0x297   : > { %p708_p11 = scmp.lt.u32.totalorder %s706_s23, %s702_s11  ;;  %p710_p10 = scmp.lt.u32.totalorder %s702_s11, %s995_s7 }
 0x298   : > { %p704_p8 = pnand %p703_p6, %p1062_p13 }
 0x299   : > { %p709_p0 = por %p708_p11, %p707_p12 }
 0x29a   : > { %p705_p4 = pneg %p704_p8 }
 0x29b   : > { %p711_p3 = por %p710_p10, %p709_p0 }
 0x29d   : > { %p712_p7 = pnand %p711_p3, %p705_p4 }
 0x29f   : > { %715 = shalt.err (!%p712_p7)
}
 0x2a0   : > { %539 = dma.vmem_to_hbm [thread:$0]  (%p1062_p13), %s997_s6, 128, %s995_s7, %s376_s25  }
 0x2a1 PF: > { %s401_s21 = sand.u32 1, %s750_s15   ;;  %p1063_p9 = scmp.ne.s32.totalorder %s1051_s22, 0 }
 0x2a2   : > { %p1064_p2 = scmp.ge.s32.totalorder %s762_s18, 2  ;;  %s402_s20 = scalar_lea.sflag [#allocation4], %s401_s21 }
 0x2a4   : > { %p553_p5 = pnand %p1064_p2, %p1063_p9 }
 0x2a6   : > { %745 = dma.done.wait (!%p553_p5), %s402_s20, 128  }
 0x2a7   : > { %747 = vsyncadd (!%p553_p5), %s402_s20, 4294967168  ;;  %p20_p1 = scmp.ge.s32.totalorder %s854_s27, 4   ;;  %s1065_s15 = smov %s754_s16 }
 0x2a8   : > { %s1066_s16 = smov %s758_s17  ;;  %s1067_s17 = smov %s885_s24 }
 0x2a9   : > { %s1068_s18 = smov %s854_s27  ;;  %22 = sbr.rel (!%p20_p1) target bundleno = 9 (0x9), region = 98 }
 0x2b0   :  { %407 = vsyncpa [#allocation3], 1 }
 0x2b1   :  { %409 = vsyncpa [#allocation3 + $0x1], 1 }
 0x2b2   :  { %410 = vsyncpa [#allocation6], 1 }
 0x2b3   :  { %412 = vsyncpa [#allocation6 + $0x1], 1 }
 0x2b4   :  { %413 = vsyncpa [#allocation4], 1 }
 0x2b5   :  { %415 = vsyncpa [#allocation4 + $0x1], 1 }

</bundles_post_ra>
